<compile_context>
chip_gen: v7x
topology: tpu7x:2x2x1
jax: 0.10.0
libtpu: 0.0.40
codegen_flags: <defaults>
</compile_context>

<pallas_src>
import functools

import jax
import jax.numpy as jnp
from jax import lax
from jax.experimental import pallas as pl
from jax.experimental.pallas import tpu as pltpu


# ---------------------------------------------------------------------------
# Fused kernel: one batch element per grid step.
#   inputs : x_q (1,L,D), x_k (1,S,D), x_v (1,S,D), wq/bq, wk/bk, wv/bv, wo/bo
#   outputs: out (1,L,D) [, attn (1,H,L,S)]
# ---------------------------------------------------------------------------
def _make_fused_attention_kernel(H, dk, dv, output_attention, use_bf16_matmul):
    mm_dtype = jnp.bfloat16 if use_bf16_matmul else None

    def _dot(a, b, dim_nums=None):
        # bf16 operands (optional) with f32 accumulation on the MXU.
        if mm_dtype is not None:
            a = a.astype(mm_dtype)
            b = b.astype(mm_dtype)
        if dim_nums is None:
            return jnp.dot(a, b, preferred_element_type=jnp.float32)
        return lax.dot_general(a, b, dim_nums, preferred_element_type=jnp.float32)

    def kernel(q_ref, k_ref, v_ref,
               wq_ref, bq_ref, wk_ref, bk_ref, wv_ref, bv_ref, wo_ref, bo_ref,
               out_ref, *maybe_attn):
        x_q = q_ref[0]                                   # (L, d_model)
        x_k = k_ref[0]                                   # (S, d_model)
        x_v = v_ref[0]                                   # (S, d_model)

        # Q/K/V projections, fused into the same kernel invocation.
        q = _dot(x_q, wq_ref[...]) + bq_ref[...]         # (L, H*dk)
        k = _dot(x_k, wk_ref[...]) + bk_ref[...]         # (S, H*dk)
        v = _dot(x_v, wv_ref[...]) + bv_ref[...]         # (S, H*dv)

        # Fold the 1/sqrt(dk) softmax scale into Q once.
        q = q * (1.0 / jnp.sqrt(jnp.float32(dk)))

        qkt_dims = (((1,), (1,)), ((), ()))              # q @ k^T without explicit transpose
        ctx_heads = []
        for h in range(H):                               # static unroll over heads (no grid overhead)
            qh = q[:, h * dk:(h + 1) * dk]               # (L, dk)
            kh = k[:, h * dk:(h + 1) * dk]               # (S, dk)
            vh = v[:, h * dv:(h + 1) * dv]               # (S, dv)

            s = _dot(qh, kh, qkt_dims)                   # (L, S) f32 scores
            m = jnp.max(s, axis=-1, keepdims=True)
            p = jnp.exp(s - m)
            denom = jnp.sum(p, axis=-1, keepdims=True)
            a = p * pl.reciprocal(denom, approx=True)    # softmax probs, f32

            if output_attention:
                maybe_attn[0][0, h] = a.astype(maybe_attn[0].dtype)

            ctx_heads.append(_dot(a, vh))                # (L, dv)

        ctx = jnp.concatenate(ctx_heads, axis=-1)        # (L, H*dv)  == (B,L,H,dv) flattened
        y = _dot(ctx, wo_ref[...]) + bo_ref[...]         # output projection, (L, d_model)
        out_ref[0] = y.astype(out_ref.dtype)

    return kernel


# ---------------------------------------------------------------------------
# AttentionLayer forward
# ---------------------------------------------------------------------------
def init_params(key, d_model, n_heads, d_keys=None, d_values=None):
    d_keys = d_keys or d_model // n_heads
    d_values = d_values or d_model // n_heads
    ks = jax.random.split(key, 8)

    def w(k, din, dout):
        return jax.random.normal(k, (din, dout), jnp.float32) * 0.02

    def b(k, dout):
        return jax.random.normal(k, (dout,), jnp.float32) * 0.02

    return {
        "wq": w(ks[0], d_model, d_keys * n_heads),   "bq": b(ks[1], d_keys * n_heads),
        "wk": w(ks[2], d_model, d_keys * n_heads),   "bk": b(ks[3], d_keys * n_heads),
        "wv": w(ks[4], d_model, d_values * n_heads), "bv": b(ks[5], d_values * n_heads),
        "wo": w(ks[6], d_values * n_heads, d_model), "bo": b(ks[7], d_model),
    }


@functools.partial(
    jax.jit, static_argnames=("n_heads", "output_attention", "use_bf16_matmul"))
def attention_layer_forward(params, queries, keys, values, *, n_heads,
                            output_attention=True, use_bf16_matmul=False):
    B, L, d_model = queries.shape
    _, S, _ = keys.shape
    H = n_heads
    hdk = params["wq"].shape[1]
    hdv = params["wv"].shape[1]
    dk = hdk // H
    dv = hdv // H

    # Biases as (1, Dout) 2-D tiles.
    bq = params["bq"].reshape(1, hdk)
    bk = params["bk"].reshape(1, hdk)
    bv = params["bv"].reshape(1, hdv)
    bo = params["bo"].reshape(1, d_model)

    def fixed_2d(shape):
        # Whole (small) weight/bias resident across the batch grid.
        return pl.BlockSpec(shape, lambda b: (0, 0))

    in_specs = [
        pl.BlockSpec((1, L, d_model), lambda b: (b, 0, 0)),   # queries
        pl.BlockSpec((1, S, d_model), lambda b: (b, 0, 0)),   # keys
        pl.BlockSpec((1, S, d_model), lambda b: (b, 0, 0)),   # values
        fixed_2d(params["wq"].shape), fixed_2d(bq.shape),
        fixed_2d(params["wk"].shape), fixed_2d(bk.shape),
        fixed_2d(params["wv"].shape), fixed_2d(bv.shape),
        fixed_2d(params["wo"].shape), fixed_2d(bo.shape),
    ]

    out_shape = [jax.ShapeDtypeStruct((B, L, d_model), queries.dtype)]
    out_specs = [pl.BlockSpec((1, L, d_model), lambda b: (b, 0, 0))]
    if output_attention:
        out_shape.append(jax.ShapeDtypeStruct((B, H, L, S), jnp.float32))
        out_specs.append(pl.BlockSpec((1, H, L, S), lambda b: (b, 0, 0, 0)))

    kernel = _make_fused_attention_kernel(H, dk, dv, output_attention, use_bf16_matmul)

    results = pl.pallas_call(
        kernel,
        out_shape=tuple(out_shape),
        grid_spec=pltpu.PrefetchScalarGridSpec(
            num_scalar_prefetch=0,
            grid=(B,),                                   # even extent -> both v7x TCs used
            in_specs=in_specs,
            out_specs=tuple(out_specs),
        ),
        compiler_params=pltpu.CompilerParams(
            dimension_semantics=("parallel",)),
    )(queries, keys, values,
      params["wq"], bq, params["wk"], bk, params["wv"], bv, params["wo"], bo)

    out = results[0]
    attn = results[1] if output_attention else None
    return out, attn


# Pure-JAX reference (mirrors the PyTorch AttentionLayer + FullAttention, eval mode).
def reference_forward(params, queries, keys, values, n_heads):
    B, L, d_model = queries.shape
    _, S, _ = keys.shape
    H = n_heads
    q = queries @ params["wq"] + params["bq"]
    k = keys @ params["wk"] + params["bk"]
    v = values @ params["wv"] + params["bv"]
    dk = q.shape[-1] // H
    dv = v.shape[-1] // H
    q = q.reshape(B, L, H, dk)
    k = k.reshape(B, S, H, dk)
    v = v.reshape(B, S, H, dv)
    scores = jnp.einsum("blhe,bshe->bhls", q, k, precision="highest")
    scores = scores / jnp.sqrt(jnp.float32(dk))
    a = jax.nn.softmax(scores, axis=-1)
    out = jnp.einsum("bhls,bshd->blhd", a, v, precision="highest").reshape(B, L, H * dv)
    out = out @ params["wo"] + params["bo"]
    return out, a


if __name__ == "__main__":
    key = jax.random.PRNGKey(0)
    kp, kq, kk, kv = jax.random.split(key, 4)

    B, L, S, d_model, n_heads = 2, 8, 8, 32, 4
    params = init_params(kp, d_model, n_heads)

    queries = jax.random.normal(kq, (B, L, d_model), jnp.float32)
    keys_in = jax.random.normal(kk, (B, S, d_model), jnp.float32)
    values  = jax.random.normal(kv, (B, S, d_model), jnp.float32)

    out, attn = attention_layer_forward(
        params, queries, keys_in, values, n_heads=n_heads, output_attention=True)
    jax.block_until_ready((out, attn))

    assert out.shape == (B, L, d_model)
    assert attn.shape == (B, n_heads, L, S)

    ref_out, ref_attn = reference_forward(params, queries, keys_in, values, n_heads)
    assert jnp.allclose(out, ref_out, atol=1e-2, rtol=1e-2)
    assert jnp.allclose(attn, ref_attn, atol=1e-2, rtol=1e-2)

    print("KERNEL_OK")
</pallas_src>

<mosaic_0001>
module attributes {stable_mosaic.version = 11 : i64} {
  func.func @kernel(%arg0: i32, %arg1: memref<1x8x32xf32, #tpu.memory_space<vmem>>, %arg2: memref<1x8x32xf32, #tpu.memory_space<vmem>>, %arg3: memref<1x8x32xf32, #tpu.memory_space<vmem>>, %arg4: memref<32x32xf32, #tpu.memory_space<vmem>>, %arg5: memref<1x32xf32, #tpu.memory_space<vmem>>, %arg6: memref<32x32xf32, #tpu.memory_space<vmem>>, %arg7: memref<1x32xf32, #tpu.memory_space<vmem>>, %arg8: memref<32x32xf32, #tpu.memory_space<vmem>>, %arg9: memref<1x32xf32, #tpu.memory_space<vmem>>, %arg10: memref<32x32xf32, #tpu.memory_space<vmem>>, %arg11: memref<1x32xf32, #tpu.memory_space<vmem>>, %arg12: memref<1x8x32xf32, #tpu.memory_space<vmem>>, %arg13: memref<1x4x8x8xf32, #tpu.memory_space<vmem>>) attributes {dimension_semantics = [#tpu.dimension_semantics<parallel>], iteration_bounds = array<i64: 2>, scalar_prefetch = 0 : i64, scratch_operands = 0 : i64, tpu.core_type = #tpu.core_type<tc>, window_params = [{transform_indices = @transform_0, window_bounds = array<i64: 1, 8, 32>}, {transform_indices = @transform_1, window_bounds = array<i64: 1, 8, 32>}, {transform_indices = @transform_2, window_bounds = array<i64: 1, 8, 32>}, {pipeline_mode = #tpu.pipeline_mode<synchronous>, transform_indices = @transform_3, window_bounds = array<i64: 32, 32>}, {pipeline_mode = #tpu.pipeline_mode<synchronous>, transform_indices = @transform_4, window_bounds = array<i64: 1, 32>}, {pipeline_mode = #tpu.pipeline_mode<synchronous>, transform_indices = @transform_5, window_bounds = array<i64: 32, 32>}, {pipeline_mode = #tpu.pipeline_mode<synchronous>, transform_indices = @transform_6, window_bounds = array<i64: 1, 32>}, {pipeline_mode = #tpu.pipeline_mode<synchronous>, transform_indices = @transform_7, window_bounds = array<i64: 32, 32>}, {pipeline_mode = #tpu.pipeline_mode<synchronous>, transform_indices = @transform_8, window_bounds = array<i64: 1, 32>}, {pipeline_mode = #tpu.pipeline_mode<synchronous>, transform_indices = @transform_9, window_bounds = array<i64: 32, 32>}, {pipeline_mode = #tpu.pipeline_mode<synchronous>, transform_indices = @transform_10, window_bounds = array<i64: 1, 32>}, {transform_indices = @transform_11, window_bounds = array<i64: 1, 8, 32>}, {transform_indices = @transform_12, window_bounds = array<i64: 1, 4, 8, 8>}]} {
    %c0 = arith.constant 0 : index
    %c0_0 = arith.constant 0 : index
    %c0_1 = arith.constant 0 : index
    %0 = vector.load %arg1[%c0, %c0_0, %c0_1] : memref<1x8x32xf32, #tpu.memory_space<vmem>>, vector<1x8x32xf32>
    %1 = vector.shape_cast %0 : vector<1x8x32xf32> to vector<8x32xf32>
    %c0_2 = arith.constant 0 : index
    %c0_3 = arith.constant 0 : index
    %c0_4 = arith.constant 0 : index
    %2 = vector.load %arg2[%c0_2, %c0_3, %c0_4] : memref<1x8x32xf32, #tpu.memory_space<vmem>>, vector<1x8x32xf32>
    %3 = vector.shape_cast %2 : vector<1x8x32xf32> to vector<8x32xf32>
    %c0_5 = arith.constant 0 : index
    %c0_6 = arith.constant 0 : index
    %c0_7 = arith.constant 0 : index
    %4 = vector.load %arg3[%c0_5, %c0_6, %c0_7] : memref<1x8x32xf32, #tpu.memory_space<vmem>>, vector<1x8x32xf32>
    %5 = vector.shape_cast %4 : vector<1x8x32xf32> to vector<8x32xf32>
    %c0_8 = arith.constant 0 : index
    %c0_9 = arith.constant 0 : index
    %6 = vector.load %arg4[%c0_8, %c0_9] : memref<32x32xf32, #tpu.memory_space<vmem>>, vector<32x32xf32>
    %cst = arith.constant dense<0.000000e+00> : vector<8x32xf32>
    %7 = tpu.matmul %1, %6, %cst {dimension_numbers = #tpu.dot_dimension_numbers<[1], [0], [0], [1], [0, 0, 1, 1], [], []>} : vector<8x32xf32>, vector<32x32xf32>, vector<8x32xf32> -> vector<8x32xf32>
    %c0_10 = arith.constant 0 : index
    %c0_11 = arith.constant 0 : index
    %8 = vector.load %arg5[%c0_10, %c0_11] : memref<1x32xf32, #tpu.memory_space<vmem>>, vector<1x32xf32>
    %9 = vector.broadcast %8 : vector<1x32xf32> to vector<8x32xf32>
    %10 = arith.addf %7, %9 : vector<8x32xf32>
    %c0_12 = arith.constant 0 : index
    %c0_13 = arith.constant 0 : index
    %11 = vector.load %arg6[%c0_12, %c0_13] : memref<32x32xf32, #tpu.memory_space<vmem>>, vector<32x32xf32>
    %cst_14 = arith.constant dense<0.000000e+00> : vector<8x32xf32>
    %12 = tpu.matmul %3, %11, %cst_14 {dimension_numbers = #tpu.dot_dimension_numbers<[1], [0], [0], [1], [0, 0, 1, 1], [], []>} : vector<8x32xf32>, vector<32x32xf32>, vector<8x32xf32> -> vector<8x32xf32>
    %c0_15 = arith.constant 0 : index
    %c0_16 = arith.constant 0 : index
    %13 = vector.load %arg7[%c0_15, %c0_16] : memref<1x32xf32, #tpu.memory_space<vmem>>, vector<1x32xf32>
    %14 = vector.broadcast %13 : vector<1x32xf32> to vector<8x32xf32>
    %15 = arith.addf %12, %14 : vector<8x32xf32>
    %c0_17 = arith.constant 0 : index
    %c0_18 = arith.constant 0 : index
    %16 = vector.load %arg8[%c0_17, %c0_18] : memref<32x32xf32, #tpu.memory_space<vmem>>, vector<32x32xf32>
    %cst_19 = arith.constant dense<0.000000e+00> : vector<8x32xf32>
    %17 = tpu.matmul %5, %16, %cst_19 {dimension_numbers = #tpu.dot_dimension_numbers<[1], [0], [0], [1], [0, 0, 1, 1], [], []>} : vector<8x32xf32>, vector<32x32xf32>, vector<8x32xf32> -> vector<8x32xf32>
    %c0_20 = arith.constant 0 : index
    %c0_21 = arith.constant 0 : index
    %18 = vector.load %arg9[%c0_20, %c0_21] : memref<1x32xf32, #tpu.memory_space<vmem>>, vector<1x32xf32>
    %19 = vector.broadcast %18 : vector<1x32xf32> to vector<8x32xf32>
    %20 = arith.addf %17, %19 : vector<8x32xf32>
    %cst_22 = arith.constant 8.000000e+00 : f32
    %21 = math.sqrt %cst_22 : f32
    %cst_23 = arith.constant 1.000000e+00 : f32
    %22 = arith.divf %cst_23, %21 : f32
    %23 = vector.broadcast %22 : f32 to vector<8x32xf32>
    %24 = arith.mulf %10, %23 : vector<8x32xf32>
    %25 = vector.extract_strided_slice %24 {offsets = [0, 0], sizes = [8, 8], strides = [1, 1]} : vector<8x32xf32> to vector<8x8xf32>
    %26 = vector.extract_strided_slice %15 {offsets = [0, 0], sizes = [8, 8], strides = [1, 1]} : vector<8x32xf32> to vector<8x8xf32>
    %27 = vector.extract_strided_slice %20 {offsets = [0, 0], sizes = [8, 8], strides = [1, 1]} : vector<8x32xf32> to vector<8x8xf32>
    %cst_24 = arith.constant dense<0.000000e+00> : vector<8x8xf32>
    %28 = tpu.matmul %25, %26, %cst_24 {dimension_numbers = #tpu.dot_dimension_numbers<[1], [1], [0], [0], [0, 0, 1, 0], [], []>} : vector<8x8xf32>, vector<8x8xf32>, vector<8x8xf32> -> vector<8x8xf32>
    %cst_25 = arith.constant dense<0xFF800000> : vector<8xf32>
    %29 = vector.multi_reduction <maximumf>, %28, %cst_25 [1] : vector<8x8xf32> to vector<8xf32>
    %30 = vector.shape_cast %29 : vector<8xf32> to vector<8x1xf32>
    %31 = vector.broadcast %30 : vector<8x1xf32> to vector<8x8xf32>
    %32 = arith.subf %28, %31 : vector<8x8xf32>
    %33 = math.exp %32 : vector<8x8xf32>
    %cst_26 = arith.constant dense<0.000000e+00> : vector<8xf32>
    %34 = vector.multi_reduction <add>, %33, %cst_26 [1] : vector<8x8xf32> to vector<8xf32>
    %35 = vector.shape_cast %34 : vector<8xf32> to vector<8x1xf32>
    %36 = tpu.reciprocal %35 {approx = true} : vector<8x1xf32> -> vector<8x1xf32>
    %37 = vector.broadcast %36 : vector<8x1xf32> to vector<8x8xf32>
    %38 = arith.mulf %33, %37 : vector<8x8xf32>
    %c0_27 = arith.constant 0 : index
    %c0_28 = arith.constant 0 : index
    %c0_29 = arith.constant 0 : index
    %c0_30 = arith.constant 0 : index
    %39 = vector.load %arg13[%c0_27, %c0_28, %c0_29, %c0_30] : memref<1x4x8x8xf32, #tpu.memory_space<vmem>>, vector<1x1x8x8xf32>
    %40 = vector.shape_cast %39 : vector<1x1x8x8xf32> to vector<8x8xf32>
    %41 = vector.shape_cast %38 : vector<8x8xf32> to vector<1x1x8x8xf32>
    tpu.vector_store %arg13[%c0_27, %c0_28, %c0_29, %c0_30], %41 {strides = array<i32>} : memref<1x4x8x8xf32, #tpu.memory_space<vmem>>, vector<1x1x8x8xf32>,
    %cst_31 = arith.constant dense<0.000000e+00> : vector<8x8xf32>
    %42 = tpu.matmul %38, %27, %cst_31 {dimension_numbers = #tpu.dot_dimension_numbers<[1], [0], [0], [1], [0, 0, 1, 1], [], []>} : vector<8x8xf32>, vector<8x8xf32>, vector<8x8xf32> -> vector<8x8xf32>
    %43 = vector.extract_strided_slice %24 {offsets = [0, 8], sizes = [8, 8], strides = [1, 1]} : vector<8x32xf32> to vector<8x8xf32>
    %44 = vector.extract_strided_slice %15 {offsets = [0, 8], sizes = [8, 8], strides = [1, 1]} : vector<8x32xf32> to vector<8x8xf32>
    %45 = vector.extract_strided_slice %20 {offsets = [0, 8], sizes = [8, 8], strides = [1, 1]} : vector<8x32xf32> to vector<8x8xf32>
    %cst_32 = arith.constant dense<0.000000e+00> : vector<8x8xf32>
    %46 = tpu.matmul %43, %44, %cst_32 {dimension_numbers = #tpu.dot_dimension_numbers<[1], [1], [0], [0], [0, 0, 1, 0], [], []>} : vector<8x8xf32>, vector<8x8xf32>, vector<8x8xf32> -> vector<8x8xf32>
    %cst_33 = arith.constant dense<0xFF800000> : vector<8xf32>
    %47 = vector.multi_reduction <maximumf>, %46, %cst_33 [1] : vector<8x8xf32> to vector<8xf32>
    %48 = vector.shape_cast %47 : vector<8xf32> to vector<8x1xf32>
    %49 = vector.broadcast %48 : vector<8x1xf32> to vector<8x8xf32>
    %50 = arith.subf %46, %49 : vector<8x8xf32>
    %51 = math.exp %50 : vector<8x8xf32>
    %cst_34 = arith.constant dense<0.000000e+00> : vector<8xf32>
    %52 = vector.multi_reduction <add>, %51, %cst_34 [1] : vector<8x8xf32> to vector<8xf32>
    %53 = vector.shape_cast %52 : vector<8xf32> to vector<8x1xf32>
    %54 = tpu.reciprocal %53 {approx = true} : vector<8x1xf32> -> vector<8x1xf32>
    %55 = vector.broadcast %54 : vector<8x1xf32> to vector<8x8xf32>
    %56 = arith.mulf %51, %55 : vector<8x8xf32>
    %c0_35 = arith.constant 0 : index
    %c1 = arith.constant 1 : index
    %c0_36 = arith.constant 0 : index
    %c0_37 = arith.constant 0 : index
    %57 = vector.load %arg13[%c0_35, %c1, %c0_36, %c0_37] : memref<1x4x8x8xf32, #tpu.memory_space<vmem>>, vector<1x1x8x8xf32>
    %58 = vector.shape_cast %57 : vector<1x1x8x8xf32> to vector<8x8xf32>
    %59 = vector.shape_cast %56 : vector<8x8xf32> to vector<1x1x8x8xf32>
    tpu.vector_store %arg13[%c0_35, %c1, %c0_36, %c0_37], %59 {strides = array<i32>} : memref<1x4x8x8xf32, #tpu.memory_space<vmem>>, vector<1x1x8x8xf32>,
    %cst_38 = arith.constant dense<0.000000e+00> : vector<8x8xf32>
    %60 = tpu.matmul %56, %45, %cst_38 {dimension_numbers = #tpu.dot_dimension_numbers<[1], [0], [0], [1], [0, 0, 1, 1], [], []>} : vector<8x8xf32>, vector<8x8xf32>, vector<8x8xf32> -> vector<8x8xf32>
    %61 = vector.extract_strided_slice %24 {offsets = [0, 16], sizes = [8, 8], strides = [1, 1]} : vector<8x32xf32> to vector<8x8xf32>
    %62 = vector.extract_strided_slice %15 {offsets = [0, 16], sizes = [8, 8], strides = [1, 1]} : vector<8x32xf32> to vector<8x8xf32>
    %63 = vector.extract_strided_slice %20 {offsets = [0, 16], sizes = [8, 8], strides = [1, 1]} : vector<8x32xf32> to vector<8x8xf32>
    %cst_39 = arith.constant dense<0.000000e+00> : vector<8x8xf32>
    %64 = tpu.matmul %61, %62, %cst_39 {dimension_numbers = #tpu.dot_dimension_numbers<[1], [1], [0], [0], [0, 0, 1, 0], [], []>} : vector<8x8xf32>, vector<8x8xf32>, vector<8x8xf32> -> vector<8x8xf32>
    %cst_40 = arith.constant dense<0xFF800000> : vector<8xf32>
    %65 = vector.multi_reduction <maximumf>, %64, %cst_40 [1] : vector<8x8xf32> to vector<8xf32>
    %66 = vector.shape_cast %65 : vector<8xf32> to vector<8x1xf32>
    %67 = vector.broadcast %66 : vector<8x1xf32> to vector<8x8xf32>
    %68 = arith.subf %64, %67 : vector<8x8xf32>
    %69 = math.exp %68 : vector<8x8xf32>
    %cst_41 = arith.constant dense<0.000000e+00> : vector<8xf32>
    %70 = vector.multi_reduction <add>, %69, %cst_41 [1] : vector<8x8xf32> to vector<8xf32>
    %71 = vector.shape_cast %70 : vector<8xf32> to vector<8x1xf32>
    %72 = tpu.reciprocal %71 {approx = true} : vector<8x1xf32> -> vector<8x1xf32>
    %73 = vector.broadcast %72 : vector<8x1xf32> to vector<8x8xf32>
    %74 = arith.mulf %69, %73 : vector<8x8xf32>
    %c0_42 = arith.constant 0 : index
    %c2 = arith.constant 2 : index
    %c0_43 = arith.constant 0 : index
    %c0_44 = arith.constant 0 : index
    %75 = vector.load %arg13[%c0_42, %c2, %c0_43, %c0_44] : memref<1x4x8x8xf32, #tpu.memory_space<vmem>>, vector<1x1x8x8xf32>
    %76 = vector.shape_cast %75 : vector<1x1x8x8xf32> to vector<8x8xf32>
    %77 = vector.shape_cast %74 : vector<8x8xf32> to vector<1x1x8x8xf32>
    tpu.vector_store %arg13[%c0_42, %c2, %c0_43, %c0_44], %77 {strides = array<i32>} : memref<1x4x8x8xf32, #tpu.memory_space<vmem>>, vector<1x1x8x8xf32>,
    %cst_45 = arith.constant dense<0.000000e+00> : vector<8x8xf32>
    %78 = tpu.matmul %74, %63, %cst_45 {dimension_numbers = #tpu.dot_dimension_numbers<[1], [0], [0], [1], [0, 0, 1, 1], [], []>} : vector<8x8xf32>, vector<8x8xf32>, vector<8x8xf32> -> vector<8x8xf32>
    %79 = vector.extract_strided_slice %24 {offsets = [0, 24], sizes = [8, 8], strides = [1, 1]} : vector<8x32xf32> to vector<8x8xf32>
    %80 = vector.extract_strided_slice %15 {offsets = [0, 24], sizes = [8, 8], strides = [1, 1]} : vector<8x32xf32> to vector<8x8xf32>
    %81 = vector.extract_strided_slice %20 {offsets = [0, 24], sizes = [8, 8], strides = [1, 1]} : vector<8x32xf32> to vector<8x8xf32>
    %cst_46 = arith.constant dense<0.000000e+00> : vector<8x8xf32>
    %82 = tpu.matmul %79, %80, %cst_46 {dimension_numbers = #tpu.dot_dimension_numbers<[1], [1], [0], [0], [0, 0, 1, 0], [], []>} : vector<8x8xf32>, vector<8x8xf32>, vector<8x8xf32> -> vector<8x8xf32>
    %cst_47 = arith.constant dense<0xFF800000> : vector<8xf32>
    %83 = vector.multi_reduction <maximumf>, %82, %cst_47 [1] : vector<8x8xf32> to vector<8xf32>
    %84 = vector.shape_cast %83 : vector<8xf32> to vector<8x1xf32>
    %85 = vector.broadcast %84 : vector<8x1xf32> to vector<8x8xf32>
    %86 = arith.subf %82, %85 : vector<8x8xf32>
    %87 = math.exp %86 : vector<8x8xf32>
    %cst_48 = arith.constant dense<0.000000e+00> : vector<8xf32>
    %88 = vector.multi_reduction <add>, %87, %cst_48 [1] : vector<8x8xf32> to vector<8xf32>
    %89 = vector.shape_cast %88 : vector<8xf32> to vector<8x1xf32>
    %90 = tpu.reciprocal %89 {approx = true} : vector<8x1xf32> -> vector<8x1xf32>
    %91 = vector.broadcast %90 : vector<8x1xf32> to vector<8x8xf32>
    %92 = arith.mulf %87, %91 : vector<8x8xf32>
    %c0_49 = arith.constant 0 : index
    %c3 = arith.constant 3 : index
    %c0_50 = arith.constant 0 : index
    %c0_51 = arith.constant 0 : index
    %93 = vector.load %arg13[%c0_49, %c3, %c0_50, %c0_51] : memref<1x4x8x8xf32, #tpu.memory_space<vmem>>, vector<1x1x8x8xf32>
    %94 = vector.shape_cast %93 : vector<1x1x8x8xf32> to vector<8x8xf32>
    %95 = vector.shape_cast %92 : vector<8x8xf32> to vector<1x1x8x8xf32>
    tpu.vector_store %arg13[%c0_49, %c3, %c0_50, %c0_51], %95 {strides = array<i32>} : memref<1x4x8x8xf32, #tpu.memory_space<vmem>>, vector<1x1x8x8xf32>,
    %cst_52 = arith.constant dense<0.000000e+00> : vector<8x8xf32>
    %96 = tpu.matmul %92, %81, %cst_52 {dimension_numbers = #tpu.dot_dimension_numbers<[1], [0], [0], [1], [0, 0, 1, 1], [], []>} : vector<8x8xf32>, vector<8x8xf32>, vector<8x8xf32> -> vector<8x8xf32>
    %97 = tpu.concatenate %42, %60, %78, %96 in 1 : vector<8x8xf32>, vector<8x8xf32>, vector<8x8xf32>, vector<8x8xf32> -> vector<8x32xf32>
    %c0_53 = arith.constant 0 : index
    %c0_54 = arith.constant 0 : index
    %98 = vector.load %arg10[%c0_53, %c0_54] : memref<32x32xf32, #tpu.memory_space<vmem>>, vector<32x32xf32>
    %cst_55 = arith.constant dense<0.000000e+00> : vector<8x32xf32>
    %99 = tpu.matmul %97, %98, %cst_55 {dimension_numbers = #tpu.dot_dimension_numbers<[1], [0], [0], [1], [0, 0, 1, 1], [], []>} : vector<8x32xf32>, vector<32x32xf32>, vector<8x32xf32> -> vector<8x32xf32>
    %c0_56 = arith.constant 0 : index
    %c0_57 = arith.constant 0 : index
    %100 = vector.load %arg11[%c0_56, %c0_57] : memref<1x32xf32, #tpu.memory_space<vmem>>, vector<1x32xf32>
    %101 = vector.broadcast %100 : vector<1x32xf32> to vector<8x32xf32>
    %102 = arith.addf %99, %101 : vector<8x32xf32>
    %c0_58 = arith.constant 0 : index
    %c0_59 = arith.constant 0 : index
    %c0_60 = arith.constant 0 : index
    %103 = vector.load %arg12[%c0_58, %c0_59, %c0_60] : memref<1x8x32xf32, #tpu.memory_space<vmem>>, vector<1x8x32xf32>
    %104 = vector.shape_cast %103 : vector<1x8x32xf32> to vector<8x32xf32>
    %105 = vector.shape_cast %102 : vector<8x32xf32> to vector<1x8x32xf32>
    tpu.vector_store %arg12[%c0_58, %c0_59, %c0_60], %105 {strides = array<i32>} : memref<1x8x32xf32, #tpu.memory_space<vmem>>, vector<1x8x32xf32>,
    return
  }
  func.func @transform_0(%arg0: i32) -> (i32, i32, i32) {
    %c0_i32 = arith.constant 0 : i32
    %c0_i32_0 = arith.constant 0 : i32
    %c0_i32_1 = arith.constant 0 : i32
    return %arg0, %c0_i32, %c0_i32_0 : i32, i32, i32
  }
  func.func @transform_1(%arg0: i32) -> (i32, i32, i32) {
    %c0_i32 = arith.constant 0 : i32
    %c0_i32_0 = arith.constant 0 : i32
    %c0_i32_1 = arith.constant 0 : i32
    return %arg0, %c0_i32, %c0_i32_0 : i32, i32, i32
  }
  func.func @transform_2(%arg0: i32) -> (i32, i32, i32) {
    %c0_i32 = arith.constant 0 : i32
    %c0_i32_0 = arith.constant 0 : i32
    %c0_i32_1 = arith.constant 0 : i32
    return %arg0, %c0_i32, %c0_i32_0 : i32, i32, i32
  }
  func.func @transform_3(%arg0: i32) -> (i32, i32) {
    %c0_i32 = arith.constant 0 : i32
    %c0_i32_0 = arith.constant 0 : i32
    %c0_i32_1 = arith.constant 0 : i32
    return %c0_i32, %c0_i32_0 : i32, i32
  }
  func.func @transform_4(%arg0: i32) -> (i32, i32) {
    %c0_i32 = arith.constant 0 : i32
    %c0_i32_0 = arith.constant 0 : i32
    %c0_i32_1 = arith.constant 0 : i32
    return %c0_i32, %c0_i32_0 : i32, i32
  }
  func.func @transform_5(%arg0: i32) -> (i32, i32) {
    %c0_i32 = arith.constant 0 : i32
    %c0_i32_0 = arith.constant 0 : i32
    %c0_i32_1 = arith.constant 0 : i32
    return %c0_i32, %c0_i32_0 : i32, i32
  }
  func.func @transform_6(%arg0: i32) -> (i32, i32) {
    %c0_i32 = arith.constant 0 : i32
    %c0_i32_0 = arith.constant 0 : i32
    %c0_i32_1 = arith.constant 0 : i32
    return %c0_i32, %c0_i32_0 : i32, i32
  }
  func.func @transform_7(%arg0: i32) -> (i32, i32) {
    %c0_i32 = arith.constant 0 : i32
    %c0_i32_0 = arith.constant 0 : i32
    %c0_i32_1 = arith.constant 0 : i32
    return %c0_i32, %c0_i32_0 : i32, i32
  }
  func.func @transform_8(%arg0: i32) -> (i32, i32) {
    %c0_i32 = arith.constant 0 : i32
    %c0_i32_0 = arith.constant 0 : i32
    %c0_i32_1 = arith.constant 0 : i32
    return %c0_i32, %c0_i32_0 : i32, i32
  }
  func.func @transform_9(%arg0: i32) -> (i32, i32) {
    %c0_i32 = arith.constant 0 : i32
    %c0_i32_0 = arith.constant 0 : i32
    %c0_i32_1 = arith.constant 0 : i32
    return %c0_i32, %c0_i32_0 : i32, i32
  }
  func.func @transform_10(%arg0: i32) -> (i32, i32) {
    %c0_i32 = arith.constant 0 : i32
    %c0_i32_0 = arith.constant 0 : i32
    %c0_i32_1 = arith.constant 0 : i32
    return %c0_i32, %c0_i32_0 : i32, i32
  }
  func.func @transform_11(%arg0: i32) -> (i32, i32, i32) {
    %c0_i32 = arith.constant 0 : i32
    %c0_i32_0 = arith.constant 0 : i32
    %c0_i32_1 = arith.constant 0 : i32
    return %arg0, %c0_i32, %c0_i32_0 : i32, i32, i32
  }
  func.func @transform_12(%arg0: i32) -> (i32, i32, i32, i32) {
    %c0_i32 = arith.constant 0 : i32
    %c0_i32_0 = arith.constant 0 : i32
    %c0_i32_1 = arith.constant 0 : i32
    %c0_i32_2 = arith.constant 0 : i32
    return %arg0, %c0_i32, %c0_i32_0, %c0_i32_1 : i32, i32, i32, i32
  }
}

</mosaic_0001>

<bundles_post_ra>
// kernel: attention_layer_forward.1
= control target key start
LH: loop header
LB: loop body
LE: loop exit
PB: predicated region body
PF: predicated region fallthrough
CT: control target
= control target key end

     0   :  { %s3137_s0 = inlined_call_operand.hbm [shape: f32[2,8,32], index: 0, kind: input, shape index: {}]   ;;  %s3138_s1 = inlined_call_operand.vmem [shape: f32[2,8,32], index: 1, kind: input, shape index: {}]   ;;  %s3139_s2 = inlined_call_operand.hbm [shape: f32[2,8,32], index: 2, kind: input, shape index: {}]   ;;  %s3140_s3 = inlined_call_operand.vmem [shape: f32[32,32], index: 3, kind: input, shape index: {}]   ;;  %s3141_s4 = inlined_call_operand.vmem [shape: f32[1,32], index: 4, kind: input, shape index: {}]   ;;  %s3142_s5 = inlined_call_operand.hbm [shape: f32[32,32], index: 5, kind: input, shape index: {}]   ;;  %s3143_s6 = inlined_call_operand.hbm [shape: f32[1,32], index: 6, kind: input, shape index: {}]   ;;  %s3144_s7 = inlined_call_operand.hbm [shape: f32[32,32], index: 7, kind: input, shape index: {}]   ;;  %s3145_s8 = inlined_call_operand.hbm [shape: f32[1,32], index: 8, kind: input, shape index: {}]   ;;  %s3146_s9 = inlined_call_operand.hbm [shape: f32[32,32], index: 9, kind: input, shape index: {}]   ;;  %s3147_s10 = inlined_call_operand.hbm [shape: f32[1,32], index: 10, kind: input, shape index: {}]   ;;  %s3148_s11 = inlined_call_operand.hbm [shape: f32[2,8,32], index: 11, kind: output, shape index: {0}]   ;;  %s3149_s12 = inlined_call_operand.hbm [shape: f32[2,4,8,8], index: 12, kind: output, shape index: {1}]  }
   0x1   :  { %3158 = sst [smem:[#allocation27_spill]] %s3138_s1 }
   0x2   :  { %3159 = sst [smem:[#allocation28_spill]] %s3141_s4 }
   0x3   :  { %3160 = sst [smem:[#allocation29_spill]] %s3142_s5 }
   0x4   :  { %3161 = sst [smem:[#allocation30_spill]] %s3143_s6 }
   0x5   :  { %3162 = sst [smem:[#allocation31_spill]] %s3144_s7 }
   0x6   :  { %3163 = sst [smem:[#allocation32_spill]] %s3145_s8 }
   0x7   :  { %3164 = sst [smem:[#allocation33_spill]] %s3146_s9 }
   0x8   :  { %3165 = sst [smem:[#allocation34_spill]] %s3148_s11 }
   0x9   :  { %3166 = sst [smem:[#allocation35_spill]] %s3149_s12 }
   0xa   :  { %18 = vsyncpa [#allocation3], 0 }
   0xb   :  { %20 = vsyncpa [#allocation3 + $0x1], 0 }
   0xc   :  { %21 = vsyncpa [#allocation6], 0 }
   0xd   :  { %23 = vsyncpa [#allocation6 + $0x1], 0 }
   0xe   :  { %24 = vsyncpa [#allocation9], 0 }
   0xf   :  { %25 = vsyncpa [#allocation12], 0 }
  0x10   :  { %26 = vsyncpa [#allocation15], 0 }
  0x11   :  { %27 = vsyncpa [#allocation4], 0 }
  0x12   :  { %29 = vsyncpa [#allocation4 + $0x1], 0 }
  0x13   :  { %30 = vsyncpa [#allocation18], 0 }
  0x14   :  { %32 = vsyncpa [#allocation18 + $0x1], 0  ;;  %s2607_s21 = smov 0   ;;  %s2609_s22 = smov 0  }
  0x15   :  { %s2611_s23 = smov 0   ;;  %s2613_s24 = smov 0  }
  0x16 LB: > { %s2520_s25 = smov [#allocation7]   ;;  %s2628_s27 = sadd.s32 4294967295, %s2518_s24   ;;  %s2518_s24 = sphi %s2613_s24, %s3202_s24   ;;  %s2514_s23 = sphi %s2611_s23, %s3201_s23   ;;  %s2510_s22 = sphi %s2609_s22, %s3200_s22   ;;  %s2506_s21 = sphi %s2607_s21, %s3199_s21  }
  0x17   : > { %s359_s26 = sshll.u32 %s2520_s25, 4  ;;  %p1828_p0 = scmp.ge.s32.totalorder %s2518_s24, 1  ;;  %s2633_s26 = int_to_ptr.vmem [resolvable:$true] %s359_s26 }
  0x18   : > { %p3154_p1 = scmp.eq.s32.totalorder %s2628_s27, 0  ;;  %p341_p2 = scmp.lt.s32.totalorder %s2518_s24, 3 }
  0x19   : > { %s2521_s29 = smov [#allocation8]   ;;  %s2522_s14 = smov [#allocation11]  }
  0x1a   : > { %p2635_p3 = pnand %p1828_p0, %p341_p2  ;;  %s373_s30 = sshll.u32 %s2521_s29, 4  ;;  %s2648_s30 = int_to_ptr.vmem [resolvable:$true] %s373_s30 }
  0x1b   : > { %s397_s15 = sshll.u32 %s2522_s14, 4  ;;  %s3169_s5 = sld [smem:[#allocation29_spill]]  ;;  %s2650_s15 = int_to_ptr.vmem [resolvable:$true] %s397_s15 }
  0x1c   : > { %s3167_s28 = scalar_select %p2635_p3, 1, 0 }
  0x1d   : > { %p2059_p5 = pneg %p2635_p3 }
  0x1f   : > { %p2644_p6 = pnand %p2059_p5, %p3154_p1 }
  0x21   : > { %s2172_s18 = scalar_lea.hbm %s3169_s5, 512  ;;  %p2660_p8 = pneg %p2644_p6 }
  0x22   : > { %p2173_p7 = scmp.ne.s32.totalorder %s3169_s5, %s2172_s18  ;;  %p2179_p11 = scmp.lt.u32.totalorder %s2172_s18, %s3169_s5 }
  0x24   : > { %p2175_p9 = pnand %p2660_p8, %p2173_p7 }
  0x26   : > { %p2176_p10 = pneg %p2175_p9 }
  0x28   : > { %p2181_p12 = pnand %p2179_p11, %p2176_p10 }
  0x2a   : > { %2184 = shalt.err (!%p2181_p12)
}
  0x2b   : > { %s2185_s16 = scalar_lea.vmem %s2633_s26, 512  ;;  %p2193_p5 = scmp.lt.s32.totalorder %s2633_s26, %s2633_s26 }
  0x2c   : > { %p2186_p13 = scmp.ne.s32.totalorder %s2633_s26, %s2185_s16  ;;  %p2194_p4 = scmp.lt.s32.totalorder %s2185_s16, %s2185_s16 }
  0x2e   : > { %p2188_p0 = pnand %p2186_p13, %p2660_p8  ;;  %p2195_p7 = por %p2194_p4, %p2193_p5 }
  0x30   : > { %p2189_p2 = pneg %p2188_p0 }
  0x32   : > { %p2196_p9 = pnand %p2195_p7, %p2189_p2 }
  0x34   : > { %2199 = shalt.err (!%p2196_p9)
}
  0x35   : > { %s3152_s17 = smov 128   ;;  %s2524_s18 = smov 8  }
  0x36   : > { %2062 = dma.hbm_to_vmem [thread:$0]  (!%p2644_p6), %s3169_s5, 512, %s2633_s26, [#allocation6], %s3152_s17, %s3152_s17, %s2524_s18  }
  0x37   : > { %s3171_s6 = sld [smem:[#allocation30_spill]] }
  0x3d   : > { %s2200_s16 = scalar_lea.hbm %s3171_s6, 16 }
  0x3e   : > { %p2201_p4 = scmp.ne.s32.totalorder %s3171_s6, %s2200_s16  ;;  %p2207_p12 = scmp.lt.u32.totalorder %s2200_s16, %s3171_s6 }
  0x40   : > { %p2203_p10 = pnand %p2201_p4, %p2660_p8 }
  0x42   : > { %p2204_p11 = pneg %p2203_p10 }
  0x44   : > { %p2209_p13 = pnand %p2207_p12, %p2204_p11 }
  0x46   : > { %2212 = shalt.err (!%p2209_p13)
}
  0x47   : > { %s2213_s26 = scalar_lea.vmem %s2648_s30, 16  ;;  %s2220_s11 = scalar_lea.vmem %s2648_s30, 32 }
  0x48   : > { %p2214_p0 = scmp.ne.s32.totalorder %s2648_s30, %s2213_s26  ;;  %p2221_p7 = scmp.lt.s32.totalorder %s2648_s30, %s2648_s30 }
  0x49   : > { %p2222_p9 = scmp.lt.s32.totalorder %s2220_s11, %s2213_s26 }
  0x4a   : > { %p2216_p2 = pnand %p2214_p0, %p2660_p8 }
  0x4b   : > { %p2223_p4 = por %p2222_p9, %p2221_p7 }
  0x4c   : > { %p2217_p5 = pneg %p2216_p2 }
  0x4e   : > { %p2224_p10 = pnand %p2223_p4, %p2217_p5 }
  0x50   : > { %2227 = shalt.err (!%p2224_p10)
}
  0x51   : > { %2065 = dma.hbm_to_vmem [thread:$0]  (!%p2644_p6), %s3171_s6, 16, %s2648_s30, [#allocation9]  }
  0x52   : > { %s3172_s8 = sld [smem:[#allocation32_spill]] }
  0x58   : > { %s2228_s20 = scalar_lea.hbm %s3172_s8, 16 }
  0x59   : > { %p2229_p11 = scmp.ne.s32.totalorder %s3172_s8, %s2228_s20  ;;  %p2235_p0 = scmp.lt.u32.totalorder %s2228_s20, %s3172_s8 }
  0x5b   : > { %p2231_p12 = pnand %p2229_p11, %p2660_p8 }
  0x5d   : > { %p2232_p13 = pneg %p2231_p12 }
  0x5f   : > { %p2237_p2 = pnand %p2235_p0, %p2232_p13 }
  0x61   : > { %2240 = shalt.err (!%p2237_p2)
}
  0x62   : > { %s2241_s30 = scalar_lea.vmem %s2650_s15, 16  ;;  %s2248_s11 = scalar_lea.vmem %s2650_s15, 32 }
  0x63   : > { %p2242_p5 = scmp.ne.s32.totalorder %s2650_s15, %s2241_s30  ;;  %p2249_p4 = scmp.lt.s32.totalorder %s2650_s15, %s2650_s15 }
  0x64   : > { %p2250_p10 = scmp.lt.s32.totalorder %s2248_s11, %s2241_s30 }
  0x65   : > { %p2244_p7 = pnand %p2242_p5, %p2660_p8 }
  0x66   : > { %p2251_p11 = por %p2250_p10, %p2249_p4 }
  0x67   : > { %p2245_p9 = pneg %p2244_p7 }
  0x69   : > { %p2252_p12 = pnand %p2251_p11, %p2245_p9 }
  0x6b   : > { %2255 = shalt.err (!%p2252_p12)
}
  0x6c   : > { %2071 = dma.hbm_to_vmem [thread:$0]  (!%p2644_p6), %s3172_s8, 16, %s2650_s15, [#allocation12]  }
  0x6d   : > { %s2525_s12 = smov [#allocation10]   ;;  %s2526_s20 = smov [#allocation13]  }
  0x6e   : > { %s383_s19 = sshll.u32 %s2525_s12, 4  ;;  %s407_s29 = sshll.u32 %s2526_s20, 4  ;;  %s384_s19 = int_to_ptr.vmem [resolvable:$true] %s383_s19  ;;  %s408_s29 = int_to_ptr.vmem [resolvable:$true] %s407_s29 }
  0x6f   : > { %s3173_s7 = sld [smem:[#allocation31_spill]] }
  0x75   : > { %s2256_s26 = scalar_lea.hbm %s3173_s7, 512 }
  0x76   : > { %p2257_p13 = scmp.ne.s32.totalorder %s3173_s7, %s2256_s26  ;;  %p2263_p5 = scmp.lt.u32.totalorder %s2256_s26, %s3173_s7 }
  0x78   : > { %p2259_p0 = pnand %p2257_p13, %p2660_p8 }
  0x7a   : > { %p2260_p2 = pneg %p2259_p0 }
  0x7c   : > { %p2265_p7 = pnand %p2263_p5, %p2260_p2 }
  0x7e   : > { %2268 = shalt.err (!%p2265_p7)
}
  0x7f   : > { %s2269_s15 = scalar_lea.vmem %s384_s19, 512  ;;  %p2277_p11 = scmp.lt.s32.totalorder %s384_s19, %s384_s19 }
  0x80   : > { %p2270_p9 = scmp.ne.s32.totalorder %s384_s19, %s2269_s15  ;;  %p2278_p12 = scmp.lt.s32.totalorder %s2269_s15, %s2269_s15 }
  0x82   : > { %p2272_p4 = pnand %p2270_p9, %p2660_p8  ;;  %p2279_p1 = por %p2278_p12, %p2277_p11 }
  0x84   : > { %p2273_p10 = pneg %p2272_p4 }
  0x86   : > { %p2280_p3 = pnand %p2279_p1, %p2273_p10 }
  0x88   : > { %2283 = shalt.err (!%p2280_p3)
}
  0x89   : > { %s3174_s4 = smov 128   ;;  %s3175_s9 = sld [smem:[#allocation33_spill]] }
  0x8a   : > { %2068 = dma.hbm_to_vmem [thread:$0]  (!%p2644_p6), %s3173_s7, 512, %s384_s19, [#allocation9], %s3174_s4, %s3174_s4, %s2524_s18  }
  0x8f   : > { %s2284_s16 = scalar_lea.hbm %s3175_s9, 512 }
  0x90   : > { %p2285_p1 = scmp.ne.s32.totalorder %s3175_s9, %s2284_s16  ;;  %p2291_p0 = scmp.lt.u32.totalorder %s2284_s16, %s3175_s9 }
  0x92   : > { %p2287_p3 = pnand %p2285_p1, %p2660_p8 }
  0x94   : > { %p2288_p13 = pneg %p2287_p3 }
  0x96   : > { %p2293_p2 = pnand %p2291_p0, %p2288_p13 }
  0x98   : > { %2296 = shalt.err (!%p2293_p2)
}
  0x99   : > { %s2297_s15 = scalar_lea.vmem %s408_s29, 512  ;;  %p2305_p4 = scmp.lt.s32.totalorder %s408_s29, %s408_s29 }
  0x9a   : > { %p2298_p5 = scmp.ne.s32.totalorder %s408_s29, %s2297_s15  ;;  %p2306_p10 = scmp.lt.s32.totalorder %s2297_s15, %s2297_s15 }
  0x9c   : > { %p2300_p7 = pnand %p2298_p5, %p2660_p8  ;;  %p2307_p11 = por %p2306_p10, %p2305_p4 }
  0x9e   : > { %p2301_p9 = pneg %p2300_p7 }
  0xa0   : > { %p2308_p12 = pnand %p2307_p11, %p2301_p9 }
  0xa2   : > { %2311 = shalt.err (!%p2308_p12)
}
  0xa3   : > { %2074 = dma.hbm_to_vmem [thread:$0]  (!%p2644_p6), %s3175_s9, 512, %s408_s29, [#allocation12], %s3174_s4, %s3174_s4, %s2524_s18  }
  0xa4   : > { %s2527_s12 = smov [#allocation14]   ;;  %s2312_s26 = scalar_lea.hbm %s3147_s10, 16 }
  0xa5   : > { %s421_s20 = sshll.u32 %s2527_s12, 4  ;;  %p2313_p1 = scmp.ne.s32.totalorder %s3147_s10, %s2312_s26  ;;  %s422_s20 = int_to_ptr.vmem [resolvable:$true] %s421_s20 }
  0xa6   : > { %p2319_p0 = scmp.lt.u32.totalorder %s2312_s26, %s3147_s10 }
  0xa7   : > { %p2315_p3 = pnand %p2313_p1, %p2660_p8 }
  0xa9   : > { %p2316_p13 = pneg %p2315_p3 }
  0xab   : > { %p2321_p2 = pnand %p2319_p0, %p2316_p13 }
  0xad   : > { %2324 = shalt.err (!%p2321_p2)
}
  0xae   : > { %s2325_s18 = scalar_lea.vmem %s422_s20, 16  ;;  %s2332_s29 = scalar_lea.vmem %s422_s20, 32 }
  0xaf   : > { %p2326_p5 = scmp.ne.s32.totalorder %s422_s20, %s2325_s18  ;;  %p2333_p4 = scmp.lt.s32.totalorder %s422_s20, %s422_s20 }
  0xb0   : > { %p2334_p10 = scmp.lt.s32.totalorder %s2332_s29, %s2325_s18 }
  0xb1   : > { %p2328_p7 = pnand %p2326_p5, %p2660_p8 }
  0xb2   : > { %p2335_p11 = por %p2334_p10, %p2333_p4 }
  0xb3   : > { %p2329_p9 = pneg %p2328_p7 }
  0xb5   : > { %p2336_p12 = pnand %p2335_p11, %p2329_p9 }
  0xb7   : > { %2339 = shalt.err (!%p2336_p12)
}
  0xb8   : > { %2077 = dma.hbm_to_vmem [thread:$0]  (!%p2644_p6), %s3147_s10, 16, %s422_s20, [#allocation15]  }
  0xb9   : > { %s1827_s25 = sadd.s32 4294967294, %s2518_s24   ;;  %s2794_s13 = sadd.s32 1, %s2518_s24  }
  0xba   : > { %s42_s17 = ssub.s32 %s2518_s24, %s2794_s13  ;;  %s45_s12 = sadd.s32 1, %s2514_s23 }
  0xbb   : > { %p43_p8 = scmp.eq.s32.totalorder %s42_s17, 0  ;;  %p52_p1 = scmp.ne.s32.totalorder %s2514_s23, %s2510_s22 }
  0xbc   : > { %p53_p3 = scmp.eq.s32.totalorder %s2518_s24, 0  ;;  %p58_p13 = scmp.ne.s32.totalorder %s2510_s22, %s2506_s21 }
  0xbd   : > { %s2805_s14 = scalar_select %p43_p8, %s2514_s23, %s45_s12  }
  0xbe   : > { %p2807_p0 = por %p53_p3, %p52_p1  ;;  %p3177_p2 = scmp.eq.s32.totalorder %s2628_s27, 0 }
  0xbf   : > { %p302_p5 = scmp.eq.s32.totalorder %s2628_s27, 1  ;;  %p308_p7 = scmp.eq.s32.totalorder %s1827_s25, 1 }
  0xc0   : > { %p2813_p6 = por %p3177_p2, %p58_p13  ;;  %p2098_p9 = scmp.lt.s32.totalorder %s2518_s24, 2 }
  0xc1   : > { %s432_s26 = sand.u32 1, %s2514_s23   ;;  %p2820_p4 = por %p302_p5, %p52_p1 }
  0xc2   : > { %s3178_s20 = scalar_select %p2813_p6, 1, 0 }
  0xc3   : > { %s3179_s30 = scalar_select %p2820_p4, 1, 0 }
  0xc4   : > { %p2824_p10 = por %p308_p7, %p58_p13  ;;  %s2828_s1 = sshll.u32 %s432_s26, 3 }
  0xc5   : > { %s1837_s15 = sshll.u32 %s2518_s24, 7  ;;  %s436_s19 = scalar_lea.vmem [#allocation2], %s2828_s1 }
  0xc6   : > { %s3180_s11 = scalar_select %p2824_p10, 1, 0 }
  0xc7   : > { %s2834_s4 = scalar_lea.hbm %s3137_s0, %s1837_s15  ;;  %s443_s25 = sshll.u32 %s436_s19, 4  ;;  %s2837_s25 = int_to_ptr.vmem [resolvable:$true] %s443_s25 }
  0xc8   : > { %p2841_p11 = pnand %p2098_p9, %p2807_p0  ;;  %s2848_s18 = scalar_lea.hbm %s3139_s2, %s1837_s15 }
  0xc9   : > { %s457_s29 = sand.u32 1, %s2518_s24   ;;  %s433_s6 = scalar_lea.sflag [#allocation3], %s432_s26 }
  0xca   : > { %s2340_s7 = scalar_lea.hbm %s2834_s4, 128  ;;  %p2342_p8 = pneg %p2841_p11 }
  0xcb   : > { %p2341_p12 = scmp.ne.s32.totalorder %s2834_s4, %s2340_s7  ;;  %s2345_s8 = scalar_lea.hbm %s3137_s0, 256 }
  0xcc   : > { %p2346_p13 = scmp.lt.u32.totalorder %s2834_s4, %s3137_s0  ;;  %p2347_p0 = scmp.lt.u32.totalorder %s2345_s8, %s2340_s7 }
  0xcd   : > { %p2343_p1 = pnand %p2342_p8, %p2341_p12  ;;  %p2349_p5 = scmp.lt.u32.totalorder %s2340_s7, %s2834_s4 }
  0xce   : > { %p2348_p2 = por %p2347_p0, %p2346_p13 }
  0xcf   : > { %p2344_p3 = pneg %p2343_p1 }
  0xd0   : > { %p2350_p7 = por %p2349_p5, %p2348_p2 }
  0xd2   : > { %p2351_p9 = pnand %p2350_p7, %p2344_p3 }
  0xd4   : > { %2354 = shalt.err (!%p2351_p9)
}
  0xd5   : > { %s2355_s26 = scalar_lea.vmem %s2837_s25, 128  ;;  %s2528_s15 = smov [#allocation2]  }
  0xd6   : > { %p2356_p12 = scmp.ne.s32.totalorder %s2837_s25, %s2355_s26  ;;  %s2360_s12 = sshll.u32 %s2528_s15, 4  ;;  %s2361_s12 = int_to_ptr.vmem [resolvable:$false] %s2360_s12 }
  0xd7   : > { %s2362_s9 = scalar_lea.vmem %s2361_s12, 256  ;;  %p2363_p4 = scmp.lt.s32.totalorder %s2837_s25, %s2361_s12 }
  0xd8   : > { %p2358_p1 = pnand %p2356_p12, %p2342_p8  ;;  %p2364_p13 = scmp.lt.s32.totalorder %s2362_s9, %s2355_s26 }
  0xda   : > { %p2359_p10 = pneg %p2358_p1  ;;  %p2365_p0 = por %p2364_p13, %p2363_p4 }
  0xdc   : > { %p2366_p2 = pnand %p2365_p0, %p2359_p10 }
  0xde   : > { %2369 = shalt.err (!%p2366_p2)
}
  0xdf   : > { %2081 = dma.hbm_to_vmem [thread:$0]  (!%p2841_p11), %s2834_s4, 128, %s2837_s25, %s433_s6  }
  0xe0   : > { %s461_s7 = scalar_lea.vmem [#allocation5], %s2828_s1  ;;  %s458_s16 = scalar_lea.sflag [#allocation6], %s457_s29 }
  0xe1   : > { %s468_s8 = sshll.u32 %s461_s7, 4  ;;  %s2370_s19 = scalar_lea.hbm %s2848_s18, 128  ;;  %s469_s8 = int_to_ptr.vmem [resolvable:$true] %s468_s8 }
  0xe2   : > { %p2371_p4 = scmp.ne.s32.totalorder %s2848_s18, %s2370_s19  ;;  %s2375_s15 = scalar_lea.hbm %s3139_s2, 256 }
  0xe3   : > { %p2376_p5 = scmp.lt.u32.totalorder %s2848_s18, %s3139_s2  ;;  %p2377_p7 = scmp.lt.u32.totalorder %s2375_s15, %s2370_s19 }
  0xe4   : > { %p2373_p10 = pnand %p2371_p4, %p2342_p8  ;;  %p2379_p12 = scmp.lt.u32.totalorder %s2370_s19, %s2848_s18 }
  0xe5   : > { %p2378_p9 = por %p2377_p7, %p2376_p5 }
  0xe6   : > { %p2374_p3 = pneg %p2373_p10 }
  0xe7   : > { %p2380_p1 = por %p2379_p12, %p2378_p9 }
  0xe9   : > { %p2381_p13 = pnand %p2380_p1, %p2374_p3 }
  0xeb   : > { %2384 = shalt.err (!%p2381_p13)
}
  0xec   : > { %s2385_s6 = scalar_lea.vmem %s469_s8, 128  ;;  %s2529_s1 = smov [#allocation5]  }
  0xed   : > { %p2386_p0 = scmp.ne.s32.totalorder %s469_s8, %s2385_s6  ;;  %s2390_s4 = sshll.u32 %s2529_s1, 4  ;;  %s2391_s4 = int_to_ptr.vmem [resolvable:$false] %s2390_s4 }
  0xee   : > { %s2392_s25 = scalar_lea.vmem %s2391_s4, 256  ;;  %p2393_p10 = scmp.lt.s32.totalorder %s469_s8, %s2391_s4 }
  0xef   : > { %p2388_p2 = pnand %p2386_p0, %p2342_p8  ;;  %p2394_p6 = scmp.lt.s32.totalorder %s2392_s25, %s2385_s6 }
  0xf1   : > { %p2389_p4 = pneg %p2388_p2  ;;  %p2395_p5 = por %p2394_p6, %p2393_p10 }
  0xf3   : > { %p2396_p7 = pnand %p2395_p5, %p2389_p4 }
  0xf5   : > { %2399 = shalt.err (!%p2396_p7)
}
  0xf6   : > { %2084 = dma.hbm_to_vmem [thread:$0]  (!%p2841_p11), %s2848_s18, 128, %s469_s8, %s458_s16  }
  0xf7   : > { %p3182_p3 = scmp.ne.s32.totalorder %s3167_s28, 0 }
  0xf8   : > { %s2901_s29 = sand.u32 (!%p3182_p3), 1, %s2510_s22   ;;  %p3183_p6 = scmp.ne.s32.totalorder (!%p3182_p3), %s3178_s20, 0 }
  0xf9   : > { %477 = sbr.rel (%p3182_p3) target bundleno = 2177 (0x881), region = 64  ;;  %s2904_s7 = sshll.u32 (!%p3182_p3), %s2901_s29, 3 }
  0xfa   : > { %s480_s19 = scalar_lea.sflag (!%p3182_p3), [#allocation3], %s2901_s29  ;;  %s483_s5 = scalar_lea.vmem (!%p3182_p3), [#allocation2], %s2904_s7 }
 0x100   : > { %2473 = dma.done.wait (%p3183_p6), %s480_s19, 128  }
 0x101   : > { %2475 = vsyncadd (%p3183_p6), %s480_s19, 4294967168  ;;  %s488_s28 = sand.u32 1, %s2628_s27   ;;  %s492_s18 = scalar_lea.vmem [#allocation5], %s2904_s7 }
 0x102   : > { %s489_s17 = scalar_lea.sflag [#allocation6], %s488_s28 }
 0x103   : > { %2477 = dma.done.wait (%p3183_p6), %s489_s17, 128  }
 0x104   : > { %2479 = vsyncadd (%p3183_p6), %s489_s17, 4294967168  ;;  %p3184_p11 = scmp.eq.s32.totalorder %s2628_s27, 0 }
 0x106   : > { %2481 = dma.done.wait (%p3184_p11), [#allocation6], 512   ;;  %p3185_p8 = pmov %p3184_p11 }
 0x108   : > { %2483 = vsyncadd (%p3185_p8), [#allocation6], 4294966784  ;;  %p3186_p9 = pmov %p3185_p8 }
 0x109   : > { %p3187_p12 = pmov %p3185_p8 }
 0x10a   : > { %2485 = dma.done.wait (%p3186_p9), [#allocation9], 528  }
 0x10b   : > { %2487 = vsyncadd (%p3187_p12), [#allocation9], 4294966768  ;;  %p3188_p1 = pmov %p3185_p8 }
 0x10d   : > { %2489 = dma.done.wait (%p3188_p1), [#allocation12], 528   ;;  %p3189_p13 = pmov %p3188_p1 }
 0x10e   : > { %p3190_p0 = pmov %p3188_p1 }
 0x10f   : > { %2491 = vsyncadd (%p3189_p13), [#allocation12], 4294966768 }
 0x110   : > { %2493 = dma.done.wait (%p3190_p0), [#allocation15], 16   ;;  %p3191_p2 = pmov %p3190_p0 }
 0x111   : > { %p571_p4 = scmp.lt.s32.totalorder %s2628_s27, 1  ;;  %v2530_v0 = vmov 0.0|0.0   ;;  %vm2531_vm0 = vmmov 0   ;;  %v2532_v1 = vmov 0.0   ;;  %v663_v2 = vld [vmem:[#allocation7] sm:$0xff]  ;;  %v664_v3 = vld [vmem:[#allocation7 + $0x8] sm:$0xff] }
 0x112   : > { %2495 = vsyncadd (%p3191_p2), [#allocation15], 4294967280  ;;  %2009 = vmatprep.subr.bf16.mxu1 %v2530_v0  ;;  %2003 = vmatprep.subr.bf16.mxu0 %v2530_v0  ;;  %v578_v4 = vld [vmem:[%s3140_s3] sm:$0xff]  ;;  %v2010_v5 = vpack.c.bf16 %v664_v3, %v663_v2  ;;  %v579_v6 = vld [vmem:[%s3140_s3 + $0x8] sm:$0xff]  ;;  %s3192_s28 = sld [smem:[#allocation27_spill]]  ;;  %vm589_vm1 = vcmask 261120  }
 0x113   : > { %1938 = vmatprep.mubr.msk.f32.mxu1 %vm2531_vm0, %v2532_v1  ;;  %1927 = vmatprep.mubr.msk.f32.mxu0 %vm2531_vm0, %v2532_v1  ;;  %s572_s20 = scalar_select %p571_p4, %s2628_s27, 1  ;;  %v665_v7 = vld [vmem:[#allocation7 + $0x10] sm:$0xff]  ;;  %v666_v8 = vld [vmem:[#allocation7 + $0x18] sm:$0xff]  ;;  %v2004_v9 = vpack.c.bf16 %v579_v6, %v578_v4  ;;  %v575_v15 = vld [vmem:[%s483_s5] sm:$0xff]  ;;  %vm832_vm2 = vcmask 64512   ;;  %vm1509_vm3 = vcmask 130048  }
 0x114   : > { %v580_v10 = vld [vmem:[%s3140_s3 + $0x10] sm:$0xff]  ;;  %v581_v11 = vld [vmem:[%s3140_s3 + $0x18] sm:$0xff]  ;;  %2011 = vmatpush3.bf16.msra.mxu1 %v2010_v5  ;;  %v2013_v12 = vpack.c.bf16 %v666_v8, %v665_v7  ;;  %v1854_v16 = vld [vmem:[#allocation8] ss:$0 sm:$0xff]  ;;  %s3193_s16 = sld [smem:[#allocation28_spill]]  ;;  %s2533_s5 = smov 120  }
 0x115   : > { %s1851_s12 = sshll.u32 %s572_s20, 3  ;;  %2005 = vmatpush3.bf16.msra.mxu0 %v2004_v9  ;;  %2012 = vmatprep.subr.bf16.mxu1 %v2530_v0  ;;  %v2007_v13 = vpack.c.bf16 %v581_v11, %v580_v10  ;;  %s2534_s26 = smov 112   ;;  %v747_v25 = vld [vmem:[#allocation10] sm:$0xff]  ;;  %v748_v26 = vld [vmem:[#allocation10 + $0x8] sm:$0xff]  ;;  %v749_v27 = vld [vmem:[#allocation10 + $0x10] sm:$0xff]  ;;  %vm1511_vm4 = vcmask 195584  }
 0x116   : > { %2006 = vmatprep.subr.bf16.mxu0 %v2530_v0  ;;  %s2535_s15 = smov 104   ;;  %v2016_v28 = vpack.c.bf16 %v748_v26, %v747_v25  ;;  %v750_v29 = vld [vmem:[#allocation10 + $0x18] sm:$0xff]  ;;  %v1856_v40 = vld [vmem:[#allocation11] ss:$0 sm:$0xff]  ;;  %s2536_s9 = smov 8  }
 0x117   : > { %v2019_v30 = vpack.c.bf16 %v750_v29, %v749_v27  ;;  %v577_v31 = vld [vmem:[%s492_s18] sm:$0xff]  ;;  %s1850_s18 = sshll.u32 %s2901_s29, 5  ;;  %v1513_v29 = vld [vmem:[#allocation13] sm:$0xff]  ;;  %s2537_s6 = smov 16  }
 0x118   : > { %s574_s17 = scalar_lea.vmem %s3192_s28, %s1851_s12  ;;  %2014 = vmatpush3.bf16.msra.mxu1 %v2013_v12  ;;  %s3007_s12 = scalar_lea.vmem [#allocation17], %s1850_s18 }
 0x119   : > { %v576_v14 = vld [vmem:[%s574_s17] sm:$0xff]  ;;  %2008 = vmatpush3.bf16.msra.mxu0 %v2007_v13  ;;  %1952 = vmatprep.subr.mxu1 %v2532_v1  ;;  %s2538_s1 = smov 24   ;;  %s1882_s4 = sshll.u32 %s2628_s27, 9 }
 0x11a   : > { %2015 = vmatprep.subr.bf16.mxu0 %v2530_v0  ;;  %v1852_v17 = vld [vmem:[%s3193_s16] ss:$0 sm:$0xff]  ;;  %s1630_s25 = sshll.u32 %s3007_s12, 4  ;;  %s3194_s17 = sld [smem:[#allocation35_spill]]  ;;  %s3060_s25 = int_to_ptr.vmem [resolvable:$true] %s1630_s25 }
 0x11b   : > { %1939 = vmatmul.mubr.msk.f32.vlgmr.msra.gmra.mrb[0].mxu1 %vm589_vm1, %v576_v14  ;;  %s1604_s8 = scalar_lea.sflag [#allocation18], %s2901_s29  ;;  %s2400_s16 = scalar_lea.vmem %s3060_s25, 512 }
 0x11c   : > { %1928 = vmatmul.mubr.msk.f32.vlgmr.msra.gmra.mrb[0].mxu0 %vm589_vm1, %v575_v15  ;;  %1954 = vmatprep.mubr.msk.f32.mxu1 %vm2531_vm0, %v2532_v1  ;;  %p2401_p10 = scmp.ne.s32.totalorder %s3060_s25, %s2400_s16  ;;  %p3195_p5 = scmp.ne.s32.totalorder %s3179_s30, 0 }
 0x11d   : > { %1949 = vmatprep.mubr.msk.f32.mxu0 %vm2531_vm0, %v2532_v1  ;;  %2017 = vmatpush3.bf16.msra.mxu0 %v2016_v28 }
 0x11e   : > { %2018 = vmatprep.subr.bf16.mxu0 %v2530_v0  ;;  %p2402_p7 = pnand %p2401_p10, %p3195_p5 }
 0x120   : > { %s3058_s20 = scalar_lea.hbm %s3194_s17, %s1882_s4  ;;  %p2403_p3 = pneg %p2402_p7 }
 0x121   : > { %2020 = vmatpush3.bf16.msra.mxu0 %v2019_v30  ;;  %v1514_v30 = vld [vmem:[#allocation13 + $0x8] sm:$0xff] }
 0x122   : > { %1972 = vmatprep.subr.mxu0 %v2532_v1 }
 0x124   : > { %1950 = vmatmul.mubr.msk.f32.vlgmr.msra.gmra.mrb[2].mxu0 %vm589_vm1, %v577_v31  ;;  %v2022_v31 = vpack.c.bf16 %v1514_v30, %v1513_v29 }
 0x125   : > { %1974 = vmatprep.mubr.msk.f32.mxu0 %vm2531_vm0, %v2532_v1 }
 0x1ee   : > { %v743_v18 = vpop.f32.mrb[0].mxu1 }
 0x1ef   : > { %v744_v19 = vadd.f32 %v1854_v16, %v743_v18  ;;  %v659_v20 = vpop.f32.mrb[0].mxu0  ;;  %v1940_v21 = vpop.f32.mrb[1].mxu1 }
 0x1f0   : > { %v660_v22 = vadd.f32 %v1852_v17, %v659_v20  ;;  %v1929_v23 = vpop.f32.mrb[1].mxu0 }
 0x1f1   : > { %996 = vrot.lane.b32.xlu1 %v744_v19, %s2533_s5  ;;  %1953 = vmatpush3.xpose.msk.msra.mxu1 %vm832_vm2, %v744_v19 }
 0x1f2   : > { %v831_v24 = vmul.f32 0.35355338, %v660_v22  ;;  %1957 = vmatprep.subr.mxu1 %v2532_v1 }
 0x1f4   : > { %1955 = vmatmul.mubr.msk.f32.vlgmr.msra.gmra.mrb[2].mxu1 %vm832_vm2, %v831_v24 }
 0x1f5   : > { %994 = vrot.lane.b32.xlu1 %v831_v24, %s2533_s5  ;;  %1959 = vmatprep.mubr.msk.f32.mxu1 %vm2531_vm0, %v2532_v1 }
 0x1f7   : > { %v827_v41 = vpop.f32.mrb[2].mxu0 }
 0x1f8   : > { %v2991_v42 = vadd.f32 %v1856_v40, %v827_v41  ;;  %v1951_v43 = vpop.f32.mrb[3].mxu0 }
 0x1f9   : > { %1162 = vrot.lane.b32.xlu1 %v831_v24, %s2534_s26 }
 0x1fa   : > { %1958 = vmatpush3.msra.mxu1 %v2991_v42 }
 0x1fb   : > { %1962 = vmatprep.subr.mxu1 %v2532_v1 }
 0x1fd   : > { %1331 = vrot.lane.b32.xlu1 %v744_v19, %s2535_s15 }
 0x201   : > { %1329 = vrot.lane.b32.xlu1 %v831_v24, %s2535_s15 }
 0x263   : > { %v997_v44 = vpop.permute.xlu1 %996 }
 0x267   : > { %v995_v45 = vpop.permute.xlu1 %994 }
 0x26b   : > { %v1163_v46 = vpop.permute.xlu1 %1162 }
 0x26f   : > { %v1332_v49 = vpop.permute.xlu1 %1331 }
 0x273   : > { %v1330_v51 = vpop.permute.xlu1 %1329 }
 0x2c7   : > { %v905_v32 = vpop.f32.mrb[2].mxu1 }
 0x2c8   : > { %v1956_v33 = vpop.f32.mrb[3].mxu1  ;;  %v909_v34 = vsel %vm832_vm2, %v905_v32, -inf }
 0x2c9   : > { %910 = vmax.xlane.f32.xlu0 %v909_v34  ;;  %v1516_v33 = vld [vmem:[#allocation13 + $0x18] sm:$0xff] }
 0x356   : > { %v911_v35 = vpop.xlane.xlu0 %910 }
 0x357   : > { %v912_v36 = vsub.f32 %v905_v32, %v911_v35  ;;  %v1515_v32 = vld [vmem:[#allocation13 + $0x10] sm:$0xff] }
 0x358   : > { %v2025_v34 = vpack.c.bf16 %v1516_v33, %v1515_v32 }
 0x359   : > { %v913_v37 = vmul.f32 1.442695, %v912_v36 }
 0x35b   : > { %2156 = vpow2.f32 %v913_v37 }
 0x365   : > { %v2157_v38 = vpop.eup %2156 }
 0x366   : > { %v915_v39 = vsel %vm832_vm2, %v2157_v38, 0.0 }
 0x367   : > { %916 = vadd.xlane.f32.xlu0 %v915_v39 }
 0x37d   : > { %1164 = vrot.lane.b32.xlu0 %v744_v19, %s2534_s26 }
 0x3f4   : > { %v917_v47 = vpop.xlane.xlu0 %916 }
 0x3f5   : > { %2158 = vrcp.f32 %v917_v47 }
 0x3f8   : > { %v1165_v48 = vpop.permute.xlu0 %1164 }
 0x3f9   : > { %1973 = vmatpush3.xpose.msk.msra.mxu0 %vm832_vm2, %v1165_v48 }
 0x3fa   : > { %1982 = vmatprep.subr.mxu0 %v2532_v1 }
 0x3fc   : > { %1975 = vmatmul.mubr.msk.f32.vlgmr.msra.gmra.mrb[4].mxu0 %vm832_vm2, %v1163_v46 }
 0x3fd   : > { %1983 = vmatpush3.xpose.msk.msra.mxu0 %vm832_vm2, %v1332_v49  ;;  %1984 = vmatprep.mubr.msk.f32.mxu0 %vm2531_vm0, %v2532_v1 }
 0x3fe   : > { %2021 = vmatprep.subr.bf16.mxu0 %v2530_v0 }
 0x3ff   : > { %v2159_v50 = vpop.eup %2158 }
 0x400   : > { %v919_v52 = vmul.f32 %v2159_v50, %v2157_v38  ;;  %1985 = vmatmul.mubr.msk.f32.vlgmr.msra.gmra.mrb[6].mxu0 %vm832_vm2, %v1330_v51 }
 0x401   : > { %2000 = vmatprep.mubr.msk.f32.mxu0 %vm2531_vm0, %v2532_v1  ;;  %2023 = vmatpush3.bf16.msra.mxu0 %v2022_v31 }
 0x402   : > { %920 = vst.msk [vmem:[%s3007_s12] sm:$0xff] %vm832_vm2, %v919_v52  ;;  %1960 = vmatmul.mubr.msk.f32.vlgmr.msra.gmra.mrb[4].mxu1 %vm832_vm2, %v919_v52  ;;  %2024 = vmatprep.subr.bf16.mxu0 %v2530_v0 }
 0x403   : > { %1963 = vmatpush3.xpose.msk.msra.mxu1 %vm832_vm2, %v997_v44  ;;  %1964 = vmatprep.mubr.msk.f32.mxu1 %vm2531_vm0, %v2532_v1 }
 0x404   : > { %1967 = vmatprep.subr.mxu1 %v2532_v1 }
 0x405   : > { %2026 = vmatpush3.bf16.msra.mxu0 %v2025_v34 }
 0x406   : > { %1965 = vmatmul.mubr.msk.f32.vlgmr.msra.gmra.mrb[6].mxu1 %vm832_vm2, %v995_v45 }
 0x407   : > { %1969 = vmatprep.mubr.msk.f32.mxu1 %vm2531_vm0, %v2532_v1 }
 0x4cf   : > { %v1236_v53 = vpop.f32.mrb[4].mxu0 }
 0x4d0   : > { %v1976_v54 = vpop.f32.mrb[5].mxu0  ;;  %v1240_v55 = vsel %vm832_vm2, %v1236_v53, -inf }
 0x4d1   : > { %1241 = vmax.xlane.f32.xlu0 %v1240_v55 }
 0x4d3   : > { %v1403_v56 = vpop.f32.mrb[6].mxu0 }
 0x4d4   : > { %v1986_v57 = vpop.f32.mrb[7].mxu0  ;;  %v1407_v63 = vsel %vm832_vm2, %v1403_v56, -inf }
 0x4d5   : > { %v3020_v58 = vpop.f32.mrb[4].mxu1 }
 0x4d6   : > { %v1961_v59 = vpop.f32.mrb[5].mxu1 }
 0x4d9   : > { %v1068_v60 = vpop.f32.mrb[6].mxu1 }
 0x4da   : > { %v1966_v61 = vpop.f32.mrb[7].mxu1  ;;  %v1072_v62 = vsel %vm832_vm2, %v1068_v60, -inf }
 0x4db   : > { %1073 = vmax.xlane.f32.xlu1 %v1072_v62 }
 0x4df   : > { %1408 = vmax.xlane.f32.xlu1 %v1407_v63 }
 0x55e   : > { %v1242_v2 = vpop.xlane.xlu0 %1241 }
 0x55f   : > { %v1243_v3 = vsub.f32 %v1236_v53, %v1242_v2 }
 0x561   : > { %v1244_v4 = vmul.f32 1.442695, %v1243_v3 }
 0x563   : > { %2160 = vpow2.f32 %v1244_v4 }
 0x568   : > { %v1074_v5 = vpop.xlane.xlu1 %1073 }
 0x569   : > { %v1075_v13 = vsub.f32 %v1068_v60, %v1074_v5 }
 0x56b   : > { %v1076_v14 = vmul.f32 1.442695, %v1075_v13 }
 0x56c   : > { %v1409_v6 = vpop.xlane.xlu1 %1408 }
 0x56d   : > { %v2161_v7 = vpop.eup %2160  ;;  %v1410_v8 = vsub.f32 %v1403_v56, %v1409_v6 }
 0x56e   : > { %v1246_v9 = vsel %vm832_vm2, %v2161_v7, 0.0 }
 0x56f   : > { %v1411_v10 = vmul.f32 1.442695, %v1410_v8  ;;  %1247 = vadd.xlane.f32.xlu0 %v1246_v9 }
 0x571   : > { %2162 = vpow2.f32 %v1411_v10 }
 0x572   : > { %2164 = vpow2.f32 %v1076_v14 }
 0x57b   : > { %v2163_v11 = vpop.eup %2162 }
 0x57c   : > { %v1413_v12 = vsel %vm832_vm2, %v2163_v11, 0.0  ;;  %v2165_v15 = vpop.eup %2164 }
 0x57d   : > { %1414 = vadd.xlane.f32.xlu1 %v1413_v12  ;;  %v1078_v16 = vsel %vm832_vm2, %v2165_v15, 0.0 }
 0x585   : > { %1086 = vrot.lane.b32.xlu0 %v2991_v42, %s2533_s5  ;;  %s2539_s5 = smov [#allocation17]  }
 0x58e   : > { %1253 = vrot.lane.b32.xlu1 %v2991_v42, %s2534_s26  ;;  %s2404_s26 = sshll.u32 %s2539_s5, 4  ;;  %s2405_s26 = int_to_ptr.vmem [resolvable:$false] %s2404_s26 }
 0x58f   : > { %p2407_p6 = scmp.lt.s32.totalorder %s3060_s25, %s2405_s26 }
 0x5b2   : > { %1079 = vadd.xlane.f32.xlu1 %v1078_v16 }
 0x5c3   : > { %1420 = vrot.lane.b32.xlu1 %v2991_v42, %s2535_s15  ;;  %s2406_s15 = scalar_lea.vmem %s2405_s26, 1024 }
 0x5c4   : > { %p2408_p11 = scmp.lt.s32.totalorder %s2406_s15, %s2400_s16 }
 0x5c6   : > { %p2409_p8 = por %p2408_p11, %p2407_p6 }
 0x5c8   : > { %p2410_p9 = pnand %p2409_p8, %p2403_p3 }
 0x5fc   : > { %v1248_v17 = vpop.xlane.xlu0 %1247 }
 0x5fd   : > { %2166 = vrcp.f32 %v1248_v17 }
 0x600   : > { %v1087_v18 = vpop.permute.xlu0 %1086 }
 0x601   : > { %1968 = vmatpush3.msra.mxu1 %v1087_v18 }
 0x602   : > { %1977 = vmatprep.subr.mxu1 %v2532_v1 }
 0x607   : > { %v2167_v19 = vpop.eup %2166 }
 0x608   : > { %v1250_v20 = vmul.f32 %v2167_v19, %v2161_v7 }
 0x60a   : > { %1867 = vst.msk [vmem:[%s3007_s12 + $0x10] sm:$0xff] %vm832_vm2, %v1250_v20  ;;  %v1415_v21 = vpop.xlane.xlu1 %1414 }
 0x60b   : > { %2168 = vrcp.f32 %v1415_v21 }
 0x60e   : > { %v1254_v24 = vpop.permute.xlu1 %1253 }
 0x615   : > { %v2169_v22 = vpop.eup %2168 }
 0x616   : > { %v1417_v23 = vmul.f32 %v2169_v22, %v2163_v11 }
 0x618   : > { %1871 = vst.msk [vmem:[%s3007_s12 + $0x18] sm:$0xff] %vm832_vm2, %v1417_v23 }
 0x63f   : > { %v1080_v25 = vpop.xlane.xlu1 %1079 }
 0x640   : > { %2170 = vrcp.f32 %v1080_v25 }
 0x643   : > { %v1421_v28 = vpop.permute.xlu1 %1420 }
 0x64a   : > { %v2171_v26 = vpop.eup %2170 }
 0x64b   : > { %v1082_v27 = vmul.f32 %v2171_v26, %v2165_v15 }
 0x64d   : > { %1863 = vst.msk [vmem:[%s3007_s12 + $0x8] sm:$0xff] %vm832_vm2, %v1082_v27  ;;  %1970 = vmatmul.mubr.msk.f32.vlgmr.msra.gmra.mrb[8].mxu1 %vm832_vm2, %v1082_v27 }
 0x64e   : > { %1978 = vmatpush3.msra.mxu1 %v1254_v24  ;;  %1979 = vmatprep.mubr.msk.f32.mxu1 %vm2531_vm0, %v2532_v1 }
 0x64f   : > { %1987 = vmatprep.subr.mxu1 %v2532_v1 }
 0x651   : > { %1980 = vmatmul.mubr.msk.f32.vlgmr.msra.gmra.mrb[10].mxu1 %vm832_vm2, %v1250_v20 }
 0x652   : > { %1988 = vmatpush3.msra.mxu1 %v1421_v28  ;;  %1989 = vmatprep.mubr.msk.f32.mxu1 %vm2531_vm0, %v2532_v1 }
 0x655   : > { %1990 = vmatmul.mubr.msk.f32.vlgmr.msra.gmra.mrb[12].mxu1 %vm832_vm2, %v1417_v23 }
 0x720   : > { %v1158_v35 = vpop.f32.mrb[8].mxu1 }
 0x721   : > { %1497 = vrot.lane.b32.xlu0 %v1158_v35, %s2536_s9  ;;  %v1971_v36 = vpop.f32.mrb[9].mxu1 }
 0x724   : > { %v1325_v37 = vpop.f32.mrb[10].mxu1 }
 0x725   : > { %1501 = vrot.lane.b32.xlu1 %v1325_v37, %s2537_s6  ;;  %v1981_v1 = vpop.f32.mrb[11].mxu1 }
 0x728   : > { %v1492_v38 = vpop.f32.mrb[12].mxu1 }
 0x729   : > { %1505 = vrot.lane.b32.xlu0 %v1492_v38, %s2538_s1  ;;  %v1991_v0 = vpop.f32.mrb[13].mxu1 }
 0x793   : > { %v1498_v39 = vpop.permute.xlu0 %1497 }
 0x794   : > { %v1508_v41 = vsel %vm832_vm2, %v3020_v58, %v1498_v39 }
 0x797   : > { %v1502_v40 = vpop.permute.xlu1 %1501 }
 0x798   : > { %v1510_v42 = vsel %vm1509_vm3, %v1508_v41, %v1502_v40 }
 0x79b   : > { %v1506_v43 = vpop.permute.xlu0 %1505 }
 0x79c   : > { %v1512_v44 = vsel %vm1511_vm4, %v1510_v42, %v1506_v43 }
 0x79d   : > { %2001 = vmatmul.mubr.msk.f32.vlgmr.msra.gmra.mrb[8].mxu0 %vm589_vm1, %v1512_v44 }
 0x79e   : > { %2413 = shalt.err (!%p2410_p9)
}
 0x79f   : > { %s2414_s18 = scalar_lea.hbm %s3058_s20, 512  ;;  %s2418_s1 = scalar_lea.hbm %s3194_s17, 1024 }
 0x7a0   : > { %p2415_p12 = scmp.ne.s32.totalorder %s3058_s20, %s2414_s18  ;;  %p2419_p0 = scmp.lt.u32.totalorder %s3058_s20, %s3194_s17 }
 0x7a1   : > { %p2420_p2 = scmp.lt.u32.totalorder %s2418_s1, %s2414_s18  ;;  %p2422_p10 = scmp.lt.u32.totalorder %s2414_s18, %s3058_s20 }
 0x7a2   : > { %p2416_p1 = pnand %p2415_p12, %p3195_p5 }
 0x7a3   : > { %p2421_p4 = por %p2420_p2, %p2419_p0 }
 0x7a4   : > { %p2417_p13 = pneg %p2416_p1 }
 0x7a5   : > { %p2423_p7 = por %p2422_p10, %p2421_p4 }
 0x7a7   : > { %p2424_p3 = pnand %p2423_p7, %p2417_p13 }
 0x7a9   : > { %2427 = shalt.err (!%p2424_p3)
}
 0x7aa   : > { %s2540_s28 = smov 128   ;;  %v1873_v45 = vld [vmem:[#allocation14] ss:$0 sm:$0xff]  ;;  %s1877_s16 = sshll.u32 %s2628_s27, 7 }
 0x7ab   : > { %2056 = dma.vmem_to_hbm [thread:$0]  (%p3195_p5), %s3060_s25, 512, %s3058_s20, %s1604_s8, %s2540_s28, %s2540_s28, %s2536_s9  }
 0x7ac   : > { %s563_s5 = scalar_lea.vmem [#allocation16], %s2904_s7  ;;  %s3196_s12 = sld [smem:[#allocation34_spill]] }
 0x7ad   : > { %s1617_s26 = sshll.u32 %s563_s5, 4  ;;  %s1599_s9 = scalar_lea.sflag [#allocation4], %s2901_s29  ;;  %s3094_s26 = int_to_ptr.vmem [resolvable:$true] %s1617_s26 }
 0x7ae   : > { %s2428_s25 = scalar_lea.vmem %s3094_s26, 128  ;;  %s2541_s27 = smov [#allocation16]  }
 0x7af   : > { %p2429_p6 = scmp.ne.s32.totalorder %s3094_s26, %s2428_s25  ;;  %s2432_s7 = sshll.u32 %s2541_s27, 4  ;;  %s2433_s7 = int_to_ptr.vmem [resolvable:$false] %s2432_s7 }
 0x7b0   : > { %s2434_s20 = scalar_lea.vmem %s2433_s7, 256  ;;  %p2435_p9 = scmp.lt.s32.totalorder %s3094_s26, %s2433_s7 }
 0x7b1   : > { %p2430_p11 = pnand %p2429_p6, %p3195_p5  ;;  %p2436_p12 = scmp.lt.s32.totalorder %s2434_s20, %s2428_s25 }
 0x7b2   : > { %s3092_s6 = scalar_lea.hbm %s3196_s12, %s1877_s16 }
 0x7b3   : > { %p2431_p8 = pneg %p2430_p11  ;;  %p2437_p1 = por %p2436_p12, %p2435_p9 }
 0x7b5   : > { %p2438_p13 = pnand %p2437_p1, %p2431_p8 }
 0x870   : > { %v1593_v46 = vpop.f32.mrb[8].mxu0 }
 0x871   : > { %v1594_v47 = vadd.f32 %v1873_v45, %v1593_v46  ;;  %v2002_v48 = vpop.f32.mrb[9].mxu0 }
 0x873   : > { %1597 = vst.msk [vmem:[%s563_s5] sm:$0xff] %vm589_vm1, %v1594_v47 }
 0x874   : > { %2441 = shalt.err (!%p2438_p13)
}
 0x875   : > { %s2442_s29 = scalar_lea.hbm %s3092_s6, 128  ;;  %s2446_s4 = scalar_lea.hbm %s3196_s12, 256 }
 0x876   : > { %p2443_p0 = scmp.ne.s32.totalorder %s3092_s6, %s2442_s29  ;;  %p2447_p10 = scmp.lt.u32.totalorder %s3092_s6, %s3196_s12 }
 0x877   : > { %p2448_p7 = scmp.lt.u32.totalorder %s2446_s4, %s2442_s29  ;;  %p2450_p6 = scmp.lt.u32.totalorder %s2442_s29, %s3092_s6 }
 0x878   : > { %p2444_p2 = pnand %p2443_p0, %p3195_p5 }
 0x879   : > { %p2449_p3 = por %p2448_p7, %p2447_p10 }
 0x87a   : > { %p2445_p4 = pneg %p2444_p2 }
 0x87b   : > { %p2451_p11 = por %p2450_p6, %p2449_p3 }
 0x87d   : > { %p2452_p8 = pnand %p2451_p11, %p2445_p4 }
 0x87f   : > { %2455 = shalt.err (!%p2452_p8)
}
 0x880   : > { %2055 = dma.vmem_to_hbm [thread:$0]  (%p3195_p5), %s3094_s26, 128, %s3092_s6, %s1599_s9  }
 0x881 PF: > { %s1645_s16 = sand.u32 1, %s2506_s21   ;;  %p3197_p9 = scmp.ne.s32.totalorder %s3180_s11, 0 }
 0x882   : > { %p3198_p12 = scmp.ge.s32.totalorder %s2518_s24, 2  ;;  %s1646_s5 = scalar_lea.sflag [#allocation4], %s1645_s16 }
 0x884   : > { %p2086_p1 = pnand %p3198_p12, %p3197_p9 }
 0x886   : > { %2497 = dma.done.wait (!%p2086_p1), %s1646_s5, 128  }
 0x887   : > { %2499 = vsyncadd (!%p2086_p1), %s1646_s5, 4294967168  ;;  %s1655_s15 = scalar_lea.sflag [#allocation18], %s1645_s16 }
 0x888   : > { %2501 = dma.done.wait (!%p2086_p1), %s1655_s15, 512  }
 0x889   : > { %2503 = vsyncadd (!%p2086_p1), %s1655_s15, 4294966784  ;;  %p35_p5 = scmp.ge.s32.totalorder %s2794_s13, 4   ;;  %s3199_s21 = smov %s2510_s22 }
 0x88a   : > { %s3200_s22 = smov %s2514_s23  ;;  %s3201_s23 = smov %s2805_s14 }
 0x88b   : > { %s3202_s24 = smov %s2794_s13  ;;  %37 = sbr.rel (!%p35_p5) target bundleno = 22 (0x16), region = 169 }
 0x892   :  { %1660 = vsyncpa [#allocation3], 1 }
 0x893   :  { %1662 = vsyncpa [#allocation3 + $0x1], 1 }
 0x894   :  { %1663 = vsyncpa [#allocation6], 1 }
 0x895   :  { %1665 = vsyncpa [#allocation6 + $0x1], 1 }
 0x896   :  { %1666 = vsyncpa [#allocation9], 1 }
 0x897   :  { %1667 = vsyncpa [#allocation12], 1 }
 0x898   :  { %1668 = vsyncpa [#allocation15], 1 }
 0x899   :  { %1669 = vsyncpa [#allocation4], 1 }
 0x89a   :  { %1671 = vsyncpa [#allocation4 + $0x1], 1 }
 0x89b   :  { %1672 = vsyncpa [#allocation18], 1 }
 0x89c   :  { %1674 = vsyncpa [#allocation18 + $0x1], 1 }

</bundles_post_ra>
